<compile_context>
chip_gen: v7x
topology: tpu7x:2x2x1
jax: 0.10.0
libtpu: 0.0.40
codegen_flags: <defaults>
</compile_context>

<pallas_src>
import functools

import jax
import jax.numpy as jnp
from jax.experimental import pallas as pl
from jax.experimental.pallas import tpu as pltpu


def _embedding_kernel(p_ref, w_ref, pe_ref, cls_ref, o_ref, *, g, n_patches):
    # p_ref:   (g*N, K) bf16  -- flattened patches of g whole batch elements
    # w_ref:   (K, D)   bf16  -- conv weight (resident, constant index_map)
    # pe_ref:  (N, D)   f32   -- pos_emb[1:] + conv bias (resident)
    # cls_ref: (1, D)   f32   -- cls_token + pos_emb[0]  (resident)
    # o_ref:   (g, N+1, D)    -- final embedding block (written in full)
    acc = jnp.dot(p_ref[...], w_ref[...], preferred_element_type=jnp.float32)  # (g*N, D)
    pe = pe_ref[...]                                  # (N, D) f32
    cls = cls_ref[...].astype(o_ref.dtype)            # (1, D)
    n = n_patches
    for b in range(g):                                # static unroll; g is small
        o_ref[b, 0:1, :] = cls
        o_ref[b, 1:, :] = (acc[b * n:(b + 1) * n, :] + pe).astype(o_ref.dtype)


def _tpu_generation():
    """Returns (target M-tile rows, physical VMEM bytes, default scoped VMEM bytes)."""
    kind = ""
    try:
        kind = jax.devices()[0].device_kind.lower()
    except Exception:
        pass
    phys = None
    try:
        phys = int(pltpu.get_tpu_info().vmem_capacity_bytes)
    except Exception:
        phys = None
    if "v7" in kind:                       # 64 MiB VMEM, 3.2 TB/s -> big tiles, 2 TCs
        rows, default_phys, scoped = 1024, 64 << 20, 32 << 20
    elif "v6" in kind:                     # 128 MiB VMEM, ~1.4 TB/s
        rows, default_phys, scoped = 640, 128 << 20, 32 << 20
    elif "v5" in kind:                     # compute-limited in-kernel; modest tiles
        rows, default_phys, scoped = 384, 128 << 20, 16 << 20
    else:
        rows, default_phys, scoped = 512, 64 << 20, 16 << 20
    return rows, (phys or default_phys), scoped


def _choose_group(batch, n_patches, rows_target, fits):
    """g = whole batch elements per M tile.  B % g == 0 and tm = g*N sublane-aligned."""
    cands = []
    for d in range(1, batch + 1):
        if batch % d:
            continue
        tm = d * n_patches
        if d < batch and tm % 16:          # bf16 patches: 16-row packing for partial blocks
            continue
        cands.append(d)                    # d == batch (full M block) is always legal
    fitting = [d for d in cands if fits(d)]
    if not fitting:
        # TODO(synk): no batch-aligned tile fits the VMEM budget (huge B*N); would
        # need padded / non-batch-aligned tiles.  Use the smallest legal tile.
        fitting = cands[:1]
    g = None
    for d in fitting:                      # smallest tile that reaches the row target
        if d * n_patches >= rows_target:
            g = d
            break
    if g is None:
        g = fitting[-1]
    if batch // g < 2:                     # prefer >= 2 grid steps (v7x megacore, pipelining)
        alt = [d for d in fitting if batch // d >= 2]
        if alt:
            g = alt[-1]
    return g


def vit_embedding(x, conv_w, conv_b, cls_token, pos_emb, patch_size,
                  out_dtype=jnp.float32):
    """
    x:         (B, C, H, W)   float32, NCHW (PyTorch layout)
    conv_w:    (D, C, P, P)   Conv2d weight (PyTorch OIHW layout)
    conv_b:    (D,)           Conv2d bias
    cls_token: (1, 1, D)
    pos_emb:   (1, N+1, D)
    returns:   (B, N+1, D)
    """
    B, C, H, W = x.shape
    P = patch_size
    D = conv_w.shape[0]
    nh, nw = H // P, W // P
    N = nh * nw
    K = C * P * P
    M = B * N

    # --- glue: patchify (a kernel=P, stride=P conv is a per-patch linear map).
    # Cast to bf16 FIRST so the fused reshape/transpose writes 2 B/elt, not 4. ---
    xb = x.astype(jnp.bfloat16)
    patches = xb.reshape(B, C, nh, P, nw, P).transpose(0, 2, 4, 1, 3, 5).reshape(M, K)

    # Weight flattening order over (C, P, P) matches the patch flattening above.
    w_mat = conv_w.reshape(D, K).T.astype(jnp.bfloat16)                          # (K, D)
    pe_patch = (pos_emb[0, 1:, :] + conv_b[None, :]).astype(jnp.float32)         # (N, D)
    cls_row = (cls_token.reshape(1, D) + pos_emb[0, 0:1, :]).astype(jnp.float32)  # (1, D)

    out_bytes = jnp.dtype(out_dtype).itemsize
    rows_target, vmem_phys, vmem_scoped = _tpu_generation()
    vmem_budget = int(vmem_phys * 0.7)

    def footprint(d):
        tm_d = d * N
        tiles = 2 * (tm_d * K * 2) + 2 * (d * (N + 1) * D * out_bytes)   # double-buffered
        residents = 2 * (K * D * 2) + 2 * (N * D * 4) + 2 * (8 * max(D, 128) * 4)
        return tiles + residents

    g = _choose_group(B, N, rows_target, lambda d: footprint(d) <= vmem_budget)
    tm = g * N
    grid = (B // g,)

    vmem_limit = int(min(int(vmem_phys * 0.9),
                         max(vmem_scoped, footprint(g) + (4 << 20))))

    cost = pl.CostEstimate(
        flops=2 * M * K * D,
        transcendentals=0,
        bytes_accessed=(M * K * 2            # patch read (bf16)
                        + K * D * 2          # weight (bf16, once)
                        + (N + 1) * D * 4    # pos-emb/bias + cls residents (once)
                        + B * (N + 1) * D * out_bytes),  # fused output write
    )

    kernel = functools.partial(_embedding_kernel, g=g, n_patches=N)

    out = pl.pallas_call(
        kernel,
        out_shape=jax.ShapeDtypeStruct((B, N + 1, D), out_dtype),
        grid_spec=pltpu.PrefetchScalarGridSpec(
            num_scalar_prefetch=0,
            grid=grid,
            in_specs=[
                pl.BlockSpec((tm, K), lambda i: (i, 0)),     # patches: tiled over M
                pl.BlockSpec((K, D), lambda i: (0, 0)),      # weight: resident
                pl.BlockSpec((N, D), lambda i: (0, 0)),      # pos-emb[1:]+bias: resident
                pl.BlockSpec((1, D), lambda i: (0, 0)),      # cls_token+pos-emb[0]: resident
            ],
            out_specs=pl.BlockSpec((g, N + 1, D), lambda i: (i, 0, 0)),
        ),
        compiler_params=pltpu.CompilerParams(
            dimension_semantics=("parallel",),
            vmem_limit_bytes=vmem_limit,
        ),
        cost_estimate=cost,
    )(patches, w_mat, pe_patch, cls_row)

    # TODO(synk): dropout omitted (identity / inference mode).
    return out


def _reference(x, conv_w, conv_b, cls_token, pos_emb, patch_size):
    # Pure-JAX reference with a real strided convolution (NCHW / OIHW).
    # Inputs cast to bf16 with f32 accumulation to match the kernel's matmul numerics.
    y = jax.lax.conv_general_dilated(
        x.astype(jnp.bfloat16), conv_w.astype(jnp.bfloat16),
        window_strides=(patch_size, patch_size),
        padding="VALID",
        dimension_numbers=("NCHW", "OIHW", "NCHW"),
        preferred_element_type=jnp.float32,
    ) + conv_b.reshape(1, -1, 1, 1)
    B, D, nh, nw = y.shape
    y = y.reshape(B, D, nh * nw).transpose(0, 2, 1)               # (B, N, D)
    cls = jnp.broadcast_to(cls_token, (B, 1, D))
    return jnp.concatenate([cls, y], axis=1) + pos_emb


if __name__ == "__main__":
    # Small config: B=2, C=4, H=W=16, patch=8 -> n_patches=4, d_model=32
    B, C, H, W = 2, 4, 16, 16
    P = 8
    D = 32
    N = (H // P) * (W // P)

    key = jax.random.PRNGKey(0)
    kx, kw, kb, kc, kp = jax.random.split(key, 5)

    x = jax.random.normal(kx, (B, C, H, W), dtype=jnp.float32)
    conv_w = jax.random.normal(kw, (D, C, P, P), dtype=jnp.float32) * 0.02
    conv_b = jax.random.normal(kb, (D,), dtype=jnp.float32) * 0.02
    cls_token = jax.random.normal(kc, (1, 1, D), dtype=jnp.float32)
    pos_emb = jax.random.normal(kp, (1, N + 1, D), dtype=jnp.float32)

    out = vit_embedding(x, conv_w, conv_b, cls_token, pos_emb, P)
    out = jax.block_until_ready(out)

    ref = _reference(x, conv_w, conv_b, cls_token, pos_emb, P)
    assert out.shape == (B, N + 1, D), out.shape
    err = float(jnp.max(jnp.abs(out - ref)))
    assert jnp.allclose(out, ref, atol=2e-3, rtol=2e-3), f"max abs err = {err}"

    print("KERNEL_OK")
</pallas_src>

<mosaic_0001>
module attributes {stable_mosaic.version = 11 : i64} {
  func.func @_embedding_kernel(%arg0: i32, %arg1: memref<8x256xbf16, #tpu.memory_space<vmem>>, %arg2: memref<256x32xbf16, #tpu.memory_space<vmem>>, %arg3: memref<4x32xf32, #tpu.memory_space<vmem>>, %arg4: memref<1x32xf32, #tpu.memory_space<vmem>>, %arg5: memref<2x5x32xf32, #tpu.memory_space<vmem>>) attributes {dimension_semantics = [#tpu.dimension_semantics<parallel>], iteration_bounds = array<i64: 1>, scalar_prefetch = 0 : i64, scratch_operands = 0 : i64, tpu.core_type = #tpu.core_type<tc>, window_params = [{transform_indices = @transform_0, window_bounds = array<i64: 8, 256>}, {pipeline_mode = #tpu.pipeline_mode<synchronous>, transform_indices = @transform_1, window_bounds = array<i64: 256, 32>}, {pipeline_mode = #tpu.pipeline_mode<synchronous>, transform_indices = @transform_2, window_bounds = array<i64: 4, 32>}, {pipeline_mode = #tpu.pipeline_mode<synchronous>, transform_indices = @transform_3, window_bounds = array<i64: 1, 32>}, {transform_indices = @transform_4, window_bounds = array<i64: 2, 5, 32>}]} {
    %c0 = arith.constant 0 : index
    %c0_0 = arith.constant 0 : index
    %0 = vector.load %arg1[%c0, %c0_0] : memref<8x256xbf16, #tpu.memory_space<vmem>>, vector<8x256xbf16>
    %c0_1 = arith.constant 0 : index
    %c0_2 = arith.constant 0 : index
    %1 = vector.load %arg2[%c0_1, %c0_2] : memref<256x32xbf16, #tpu.memory_space<vmem>>, vector<256x32xbf16>
    %cst = arith.constant dense<0.000000e+00> : vector<8x32xf32>
    %2 = tpu.matmul %0, %1, %cst {dimension_numbers = #tpu.dot_dimension_numbers<[1], [0], [0], [1], [0, 0, 1, 1], [], []>} : vector<8x256xbf16>, vector<256x32xbf16>, vector<8x32xf32> -> vector<8x32xf32>
    %c0_3 = arith.constant 0 : index
    %c0_4 = arith.constant 0 : index
    %3 = vector.load %arg3[%c0_3, %c0_4] : memref<4x32xf32, #tpu.memory_space<vmem>>, vector<4x32xf32>
    %c0_5 = arith.constant 0 : index
    %c0_6 = arith.constant 0 : index
    %4 = vector.load %arg4[%c0_5, %c0_6] : memref<1x32xf32, #tpu.memory_space<vmem>>, vector<1x32xf32>
    %c0_7 = arith.constant 0 : index
    %c0_8 = arith.constant 0 : index
    %c0_9 = arith.constant 0 : index
    %5 = vector.load %arg5[%c0_7, %c0_8, %c0_9] : memref<2x5x32xf32, #tpu.memory_space<vmem>>, vector<1x1x32xf32>
    %6 = vector.shape_cast %5 : vector<1x1x32xf32> to vector<1x32xf32>
    %7 = vector.shape_cast %4 : vector<1x32xf32> to vector<1x1x32xf32>
    tpu.vector_store %arg5[%c0_7, %c0_8, %c0_9], %7 {strides = array<i32>} : memref<2x5x32xf32, #tpu.memory_space<vmem>>, vector<1x1x32xf32>,
    %8 = vector.extract_strided_slice %2 {offsets = [0, 0], sizes = [4, 32], strides = [1, 1]} : vector<8x32xf32> to vector<4x32xf32>
    %9 = arith.addf %8, %3 : vector<4x32xf32>
    %c0_10 = arith.constant 0 : index
    %c1 = arith.constant 1 : index
    %c0_11 = arith.constant 0 : index
    %10 = vector.load %arg5[%c0_10, %c1, %c0_11] : memref<2x5x32xf32, #tpu.memory_space<vmem>>, vector<1x4x32xf32>
    %11 = vector.shape_cast %10 : vector<1x4x32xf32> to vector<4x32xf32>
    %12 = vector.shape_cast %9 : vector<4x32xf32> to vector<1x4x32xf32>
    tpu.vector_store %arg5[%c0_10, %c1, %c0_11], %12 {strides = array<i32>} : memref<2x5x32xf32, #tpu.memory_space<vmem>>, vector<1x4x32xf32>,
    %c1_12 = arith.constant 1 : index
    %c0_13 = arith.constant 0 : index
    %c0_14 = arith.constant 0 : index
    %13 = vector.load %arg5[%c1_12, %c0_13, %c0_14] : memref<2x5x32xf32, #tpu.memory_space<vmem>>, vector<1x1x32xf32>
    %14 = vector.shape_cast %13 : vector<1x1x32xf32> to vector<1x32xf32>
    %15 = vector.shape_cast %4 : vector<1x32xf32> to vector<1x1x32xf32>
    tpu.vector_store %arg5[%c1_12, %c0_13, %c0_14], %15 {strides = array<i32>} : memref<2x5x32xf32, #tpu.memory_space<vmem>>, vector<1x1x32xf32>,
    %16 = vector.extract_strided_slice %2 {offsets = [4, 0], sizes = [4, 32], strides = [1, 1]} : vector<8x32xf32> to vector<4x32xf32>
    %17 = arith.addf %16, %3 : vector<4x32xf32>
    %c1_15 = arith.constant 1 : index
    %c1_16 = arith.constant 1 : index
    %c0_17 = arith.constant 0 : index
    %18 = vector.load %arg5[%c1_15, %c1_16, %c0_17] : memref<2x5x32xf32, #tpu.memory_space<vmem>>, vector<1x4x32xf32>
    %19 = vector.shape_cast %18 : vector<1x4x32xf32> to vector<4x32xf32>
    %20 = vector.shape_cast %17 : vector<4x32xf32> to vector<1x4x32xf32>
    tpu.vector_store %arg5[%c1_15, %c1_16, %c0_17], %20 {strides = array<i32>} : memref<2x5x32xf32, #tpu.memory_space<vmem>>, vector<1x4x32xf32>,
    return
  }
  func.func @transform_0(%arg0: i32) -> (i32, i32) {
    %c0_i32 = arith.constant 0 : i32
    %c0_i32_0 = arith.constant 0 : i32
    return %arg0, %c0_i32 : i32, i32
  }
  func.func @transform_1(%arg0: i32) -> (i32, i32) {
    %c0_i32 = arith.constant 0 : i32
    %c0_i32_0 = arith.constant 0 : i32
    %c0_i32_1 = arith.constant 0 : i32
    return %c0_i32, %c0_i32_0 : i32, i32
  }
  func.func @transform_2(%arg0: i32) -> (i32, i32) {
    %c0_i32 = arith.constant 0 : i32
    %c0_i32_0 = arith.constant 0 : i32
    %c0_i32_1 = arith.constant 0 : i32
    return %c0_i32, %c0_i32_0 : i32, i32
  }
  func.func @transform_3(%arg0: i32) -> (i32, i32) {
    %c0_i32 = arith.constant 0 : i32
    %c0_i32_0 = arith.constant 0 : i32
    %c0_i32_1 = arith.constant 0 : i32
    return %c0_i32, %c0_i32_0 : i32, i32
  }
  func.func @transform_4(%arg0: i32) -> (i32, i32, i32) {
    %c0_i32 = arith.constant 0 : i32
    %c0_i32_0 = arith.constant 0 : i32
    %c0_i32_1 = arith.constant 0 : i32
    return %arg0, %c0_i32, %c0_i32_0 : i32, i32, i32
  }
}

</mosaic_0001>

<bundles_post_ra>
// kernel: tpu_custom_call.1
= control target key start
LH: loop header
LB: loop body
LE: loop exit
PB: predicated region body
PF: predicated region fallthrough
CT: control target
= control target key end

     0   :  { %vm196_vm0 = vcmask 253952   ;;  %vm199_vm1 = vcmask 257024   ;;  %vm207_vm2 = vcmask 261124   ;;  %s367_s1 = inlined_call_operand.vmem [shape: bf16[256,32], index: 1, kind: input, shape index: {}]   ;;  %s368_s0 = inlined_call_operand.vmem [shape: bf16[8,256], index: 0, kind: input, shape index: {}]   ;;  %s369_s3 = inlined_call_operand.vmem [shape: f32[1,32], index: 3, kind: input, shape index: {}]   ;;  %s370_s4 = inlined_call_operand.vmem [shape: f32[2,5,32], index: 4, kind: output, shape index: {}]   ;;  %s371_s2 = inlined_call_operand.vmem [shape: f32[4,32], index: 2, kind: input, shape index: {}]  }
   0x1   :  { %v255_v0 = vld [vmem:[%s367_s1 + $0x40] sm:$0xff]   ;;  %v257_v2 = vld [vmem:[%s367_s1 + $0x48] sm:$0xff]   ;;  %v259_v4 = vld [vmem:[%s367_s1 + $0x50] sm:$0xff]  }
   0x2   :  { %v256_v1 = vld [vmem:[%s367_s1] sm:$0xff]   ;;  %233 = vmatprep.subr.bf16.mxu0 %v255_v0  ;;  %v258_v3 = vld [vmem:[%s367_s1 + $0x8] sm:$0xff]   ;;  %v260_v5 = vld [vmem:[%s367_s1 + $0x10] sm:$0xff]  }
   0x3   :  { %234 = vmatpush3.bf16.msra.mxu0 %v256_v1  ;;  %v261_v6 = vld [vmem:[%s367_s1 + $0x58] sm:$0xff]   ;;  %v263_v8 = vld [vmem:[%s367_s1 + $0x60] sm:$0xff]   ;;  %v265_v10 = vld [vmem:[%s367_s1 + $0x68] sm:$0xff]  }
   0x4   :  { %235 = vmatprep.subr.bf16.mxu0 %v257_v2  ;;  %v262_v7 = vld [vmem:[%s367_s1 + $0x18] sm:$0xff]   ;;  %v264_v9 = vld [vmem:[%s367_s1 + $0x20] sm:$0xff]   ;;  %v266_v13 = vld [vmem:[%s367_s1 + $0x28] sm:$0xff]  }
   0x5   :  { %v18_v11 = vld [vmem:[%s368_s0] sm:$0xff]  ;;  %v267_v14 = vld [vmem:[%s367_s1 + $0x70] sm:$0xff]   ;;  %v269_v16 = vld [vmem:[%s367_s1 + $0x78] sm:$0xff]  }
   0x6   :  { %v214_v12 = vcombine.high %v18_v11, %v18_v11  ;;  %v268_v15 = vld [vmem:[%s367_s1 + $0x30] sm:$0xff]   ;;  %v270_v17 = vld [vmem:[%s367_s1 + $0x38] sm:$0xff]   ;;  %v213_v18 = vcombine.low %v18_v11, %v18_v11  ;;  %v195_v19 = vld [vmem:[%s369_s3] sm:$0x1] }
   0x7   :  { %236 = vmatpush3.bf16.msra.mxu0 %v258_v3  ;;  %197 = vst.msk [vmem:[%s370_s4] sm:$0x1] %vm196_vm0, %v195_v19  ;;  %231 = vst.msk [vmem:[%s370_s4 + $0x8] sm:$0x1] %vm196_vm0, %v195_v19  ;;  %v194_v20 = vld [vmem:[%s371_s2] sm:$0xf] }
   0x8   :  { %237 = vmatprep.subr.bf16.mxu0 %v259_v4  ;;  %186 = vmatprep.mubr.bf16.mxu0 %v214_v12  ;;  %v204_v22 = vrot.slane %v194_v20, 4 }
   0xb   :  { %238 = vmatpush3.bf16.msra.mxu0 %v260_v5 }
   0xc   :  { %239 = vmatprep.subr.bf16.mxu0 %v261_v6 }
   0xf   :  { %240 = vmatpush3.bf16.msra.mxu0 %v262_v7 }
  0x10   :  { %241 = vmatprep.subr.bf16.mxu0 %v263_v8 }
  0x13   :  { %242 = vmatpush3.bf16.msra.mxu0 %v264_v9 }
  0x14   :  { %243 = vmatprep.subr.bf16.mxu0 %v265_v10 }
  0x17   :  { %244 = vmatpush3.bf16.msra.mxu0 %v266_v13 }
  0x18   :  { %245 = vmatprep.subr.bf16.mxu0 %v267_v14 }
  0x1b   :  { %246 = vmatpush3.bf16.msra.mxu0 %v268_v15 }
  0x1c   :  { %247 = vmatprep.subr.bf16.mxu0 %v269_v16 }
  0x1f   :  { %248 = vmatpush3.bf16.msra.mxu0 %v270_v17 }
  0x22   :  { %187 = vmatmul.mubr.bf16.vlgmr.msra.gmra.mrb[0].mxu0 %v213_v18 }
  0xf5   :  { %v249_v21 = vpop.f32.mrb[0].mxu0 }
  0xf6   :  { %v250_v23 = vpop.f32.mrb[1].mxu0 }
  0xf7   :  { %v251_v24 = vadd.f32 %v250_v23, %v249_v21  ;;  %v252_v25 = vpop.f32.mrb[2].mxu0 }
  0xf8   :  { %v253_v26 = vpop.f32.mrb[3].mxu0 }
  0xf9   :  { %v198_v27 = vadd.f32 %v251_v24, %v194_v20  ;;  %v206_v28 = vadd.f32 %v251_v24, %v204_v22 }
  0xfb   :  { %200 = vst.msk [vmem:[%s370_s4 + $0x1] sm:$0xf] %vm199_vm1, %v198_v27 }
  0xfc   :  { %232 = vst.msk [vmem:[%s370_s4 + $0x5] sm:$0xf0] %vm207_vm2, %v206_v28 }

</bundles_post_ra>
